<compile_context>
chip_gen: v7x
topology: tpu7x:2x2x1
jax: 0.10.0
libtpu: 0.0.40
codegen_flags: <defaults>
</compile_context>

<pallas_src>
import jax
import jax.numpy as jnp
from jax.experimental import pallas as pl
from jax.experimental.pallas import tpu as pltpu

_MIB = 1 << 20


def _aa_expander_kernel(x_ref, w_ref, be_ref, o_ref):
    # One (tm, tn) output tile per grid step: MXU matmul + fused (bias + aa_embed) add.
    acc = jnp.dot(x_ref[...], w_ref[...], preferred_element_type=jnp.float32)
    o_ref[...] = (acc + be_ref[...]).astype(o_ref.dtype)


def _round_up(x, m):
    return ((x + m - 1) // m) * m


def _vmem_capacity_bytes():
    # Generation-aware VMEM size (128 MiB on v5e/v6e, 64 MiB per TC on v7x).
    try:
        info = pltpu.get_tpu_info()
        cap = getattr(info, "vmem_capacity_bytes", None)
        if cap:
            return int(cap)
    except Exception:
        pass
    return 64 * _MIB  # conservative fallback: tiles sized for this fit everywhere


def aa_expander_forward(bb_feat, weight, bias, aa_embed, *, tm=None, tn=None,
                        compute_dtype=None, out_dtype=None, vmem_limit_bytes=None):
    """bb_feat: (B, L, bb_dim)
       weight:  (bb_dim, 20*head_dim)   (already transposed from torch's (out, in))
       bias:    (20*head_dim,)
       aa_embed:(20, head_dim)
       returns  mut1_feat: (B, L, 20, head_dim)
    """
    B, L, K = bb_feat.shape
    Kw, N = weight.shape
    assert Kw == K
    A, head_dim = aa_embed.shape
    assert A * head_dim == N
    M = B * L

    orig_dtype = bb_feat.dtype
    if compute_dtype is not None:
        # Optional narrow streams (e.g. bf16); accumulation below stays f32.
        bb_feat = bb_feat.astype(compute_dtype)
        weight = weight.astype(compute_dtype)
    if out_dtype is None:
        out_dtype = orig_dtype

    # Host-side fusion: bias + flattened embedding -> single (1, N) f32 operand.
    # Row-major (20, head_dim) flattening matches torch's .view(B, L, 20, head_dim).
    fused = (bias.astype(jnp.float32).reshape(1, N)
             + aa_embed.astype(jnp.float32).reshape(1, N))

    x_isz = jnp.dtype(bb_feat.dtype).itemsize
    w_isz = jnp.dtype(weight.dtype).itemsize
    be_isz = 4
    o_isz = jnp.dtype(out_dtype).itemsize

    # ---- VMEM budget / explicit limit -------------------------------------
    vmem_cap = _vmem_capacity_bytes()
    buf_budget = int(vmem_cap * 0.40)           # what pipelined buffers may occupy
    if vmem_limit_bytes is None:
        vmem_limit_bytes = int(min(vmem_cap * 0.60, buf_budget + 8 * _MIB))

    # ---- N tile: keep weight + fused bias VMEM-resident when small ----------
    resident_bytes = 2 * (K * N * w_isz + N * be_isz)   # double-buffered footprint
    if tn is None:
        tn = N if resident_bytes <= max(4 * _MIB, buf_budget // 4) else 2048
    if tn >= N:
        tn = N                                  # full-extent block, no padding needed
    else:
        tn = min(_round_up(tn, 128), N)
        if tn == N:
            pass
    Np = N if tn == N else _round_up(N, tn)

    # ---- M tile: VMEM-budget-driven, >=2 blocks for megacore ---------------
    if tm is None:
        fixed = 2 * (K * tn * w_isz + tn * be_isz)        # weight + bias buffers
        avail = max(buf_budget - fixed, 0)
        per_row = 2 * (K * x_isz + tn * o_isz)            # x + out, double-buffered
        tm_cap = max(8, (avail // per_row) // 8 * 8)
        tm_cap = min(tm_cap, 2048)                        # overhead amortized by here
        Mp0 = _round_up(M, 8)
        # >=2 M-blocks so both TensorCores (v7x) get work; balance block sizes so
        # padding stays < ~8 rows per block (zero in the common case).
        nm = max(pl.cdiv(Mp0, tm_cap), 2 if Mp0 >= 16 else 1)
        tm = _round_up(pl.cdiv(Mp0, nm), 8)
    else:
        tm = _round_up(tm, 8)
    Mp = _round_up(M, tm)

    grid_m = Mp // tm
    grid_n = Np // tn

    # ---- grid axis order: stream the cheaper operand redundantly -----------
    if grid_n == 1:
        m_outer = True          # weight/bias block index constant -> fetched once
    else:
        w_refetch = (grid_m - 1) * K * Np * w_isz
        x_refetch = (grid_n - 1) * Mp * K * x_isz
        m_outer = w_refetch <= x_refetch

    if m_outer:
        grid = (grid_m, grid_n)
        x_map = lambda i, j: (i, 0)
        w_map = lambda i, j: (0, j)
        be_map = lambda i, j: (0, j)
        o_map = lambda i, j: (i, j)
        x_bytes = Mp * K * x_isz
        w_bytes = (grid_m if grid_n > 1 else 1) * K * Np * w_isz
        be_bytes = (grid_m if grid_n > 1 else 1) * Np * be_isz
    else:
        grid = (grid_n, grid_m)
        x_map = lambda j, i: (i, 0)
        w_map = lambda j, i: (0, j)
        be_map = lambda j, i: (0, j)
        o_map = lambda j, i: (i, j)
        x_bytes = grid_n * Mp * K * x_isz
        w_bytes = K * Np * w_isz
        be_bytes = Np * be_isz
    o_bytes = Mp * Np * o_isz

    # ---- operand prep (padding is a rare, tiny fallback path) --------------
    x2d = bb_feat.reshape(M, K)
    if Mp != M:
        x2d = jnp.pad(x2d, ((0, Mp - M), (0, 0)))
    w2d, be2d = weight, fused
    if Np != N:
        w2d = jnp.pad(w2d, ((0, 0), (0, Np - N)))
        be2d = jnp.pad(be2d, ((0, 0), (0, Np - N)))

    cost = pl.CostEstimate(
        flops=2 * Mp * Np * K,
        transcendentals=0,
        bytes_accessed=x_bytes + w_bytes + be_bytes + o_bytes,
    )

    out2d = pl.pallas_call(
        _aa_expander_kernel,
        out_shape=jax.ShapeDtypeStruct((Mp, Np), out_dtype),
        grid_spec=pltpu.PrefetchScalarGridSpec(
            num_scalar_prefetch=0,
            grid=grid,
            in_specs=[
                pl.BlockSpec((tm, K), x_map),    # activation M-tile (full K)
                pl.BlockSpec((K, tn), w_map),    # weight N-tile (full K)
                pl.BlockSpec((1, tn), be_map),   # fused bias + aa_embed N-tile
            ],
            out_specs=pl.BlockSpec((tm, tn), o_map),
        ),
        compiler_params=pltpu.CompilerParams(
            dimension_semantics=("parallel", "parallel"),
            vmem_limit_bytes=int(vmem_limit_bytes),
        ),
        cost_estimate=cost,
    )(x2d, w2d, be2d)

    if Mp != M or Np != N:
        out2d = out2d[:M, :N]
    return out2d.reshape(B, L, A, head_dim)


if __name__ == "__main__":
    # Small shapes consistent with the module: bb_dim = backbone.hdim, head_dim = args.head_dim.
    B, L = 2, 8
    bb_dim = 64
    head_dim = 32          # 20 * 32 = 640 -> weight stays VMEM-resident, grid = (2, 1)
    N = 20 * head_dim

    key = jax.random.PRNGKey(0)
    k_x, k_w, k_b, k_e = jax.random.split(key, 4)

    # Deterministic parameter init (synthetic; mimics nn.Linear / nn.Embedding scales).
    bb_feat = jax.random.normal(k_x, (B, L, bb_dim), dtype=jnp.float32)
    bound = 1.0 / (bb_dim ** 0.5)
    weight = jax.random.uniform(k_w, (bb_dim, N), minval=-bound, maxval=bound,
                                dtype=jnp.float32)
    bias = jax.random.uniform(k_b, (N,), minval=-bound, maxval=bound,
                              dtype=jnp.float32)
    aa_embed = jax.random.normal(k_e, (20, head_dim), dtype=jnp.float32)

    mut1_feat = aa_expander_forward(bb_feat, weight, bias, aa_embed)
    mut1_feat = jax.block_until_ready(mut1_feat)

    # Pure-JAX reference check.
    ref = (jnp.einsum("blk,kn->bln", bb_feat, weight) + bias).reshape(B, L, 20, head_dim)
    ref = ref + aa_embed[None, None]
    assert mut1_feat.shape == (B, L, 20, head_dim)
    assert jnp.allclose(mut1_feat, ref, atol=1e-4, rtol=1e-4)

    print("KERNEL_OK")
</pallas_src>

<mosaic_0001>
module attributes {stable_mosaic.version = 11 : i64} {
  func.func @_aa_expander_kernel(%arg0: i32, %arg1: i32, %arg2: memref<8x64xf32, #tpu.memory_space<vmem>>, %arg3: memref<64x640xf32, #tpu.memory_space<vmem>>, %arg4: memref<1x640xf32, #tpu.memory_space<vmem>>, %arg5: memref<8x640xf32, #tpu.memory_space<vmem>>) attributes {dimension_semantics = [#tpu.dimension_semantics<parallel>, #tpu.dimension_semantics<parallel>], iteration_bounds = array<i64: 2, 1>, scalar_prefetch = 0 : i64, scratch_operands = 0 : i64, tpu.core_type = #tpu.core_type<tc>, window_params = [{transform_indices = @transform_0, window_bounds = array<i64: 8, 64>}, {transform_indices = @transform_1, window_bounds = array<i64: 64, 640>}, {transform_indices = @transform_2, window_bounds = array<i64: 1, 640>}, {transform_indices = @transform_3, window_bounds = array<i64: 8, 640>}]} {
    %c0 = arith.constant 0 : index
    %c0_0 = arith.constant 0 : index
    %0 = vector.load %arg2[%c0, %c0_0] : memref<8x64xf32, #tpu.memory_space<vmem>>, vector<8x64xf32>
    %c0_1 = arith.constant 0 : index
    %c0_2 = arith.constant 0 : index
    %1 = vector.load %arg3[%c0_1, %c0_2] : memref<64x640xf32, #tpu.memory_space<vmem>>, vector<64x640xf32>
    %cst = arith.constant dense<0.000000e+00> : vector<8x640xf32>
    %2 = tpu.matmul %0, %1, %cst {dimension_numbers = #tpu.dot_dimension_numbers<[1], [0], [0], [1], [0, 0, 1, 1], [], []>} : vector<8x64xf32>, vector<64x640xf32>, vector<8x640xf32> -> vector<8x640xf32>
    %c0_3 = arith.constant 0 : index
    %c0_4 = arith.constant 0 : index
    %3 = vector.load %arg4[%c0_3, %c0_4] : memref<1x640xf32, #tpu.memory_space<vmem>>, vector<1x640xf32>
    %4 = vector.broadcast %3 : vector<1x640xf32> to vector<8x640xf32>
    %5 = arith.addf %2, %4 : vector<8x640xf32>
    %c0_5 = arith.constant 0 : index
    %c0_6 = arith.constant 0 : index
    %6 = vector.load %arg5[%c0_5, %c0_6] : memref<8x640xf32, #tpu.memory_space<vmem>>, vector<8x640xf32>
    tpu.vector_store %arg5[%c0_5, %c0_6], %5 {strides = array<i32>} : memref<8x640xf32, #tpu.memory_space<vmem>>, vector<8x640xf32>,
    return
  }
  func.func @transform_0(%arg0: i32, %arg1: i32) -> (i32, i32) {
    %c0_i32 = arith.constant 0 : i32
    %c0_i32_0 = arith.constant 0 : i32
    return %arg0, %c0_i32 : i32, i32
  }
  func.func @transform_1(%arg0: i32, %arg1: i32) -> (i32, i32) {
    %c0_i32 = arith.constant 0 : i32
    %c0_i32_0 = arith.constant 0 : i32
    return %c0_i32, %arg1 : i32, i32
  }
  func.func @transform_2(%arg0: i32, %arg1: i32) -> (i32, i32) {
    %c0_i32 = arith.constant 0 : i32
    %c0_i32_0 = arith.constant 0 : i32
    return %c0_i32, %arg1 : i32, i32
  }
  func.func @transform_3(%arg0: i32, %arg1: i32) -> (i32, i32) {
    %c0_i32 = arith.constant 0 : i32
    return %arg0, %arg1 : i32, i32
  }
}

</mosaic_0001>

<bundles_post_ra>
// kernel: tpu_custom_call.1
= control target key start
LH: loop header
LB: loop body
LE: loop exit
PB: predicated region body
PF: predicated region fallthrough
CT: control target
= control target key end

     0   :  { %8 = vsyncpa [#allocation3], 0  ;;  %s1225_s0 = inlined_call_operand.hbm [shape: f32[16,64], index: 0, kind: input, shape index: {}]   ;;  %s1226_s1 = inlined_call_operand.hbm [shape: f32[64,640], index: 1, kind: input, shape index: {}]   ;;  %s1227_s2 = inlined_call_operand.vmem [shape: f32[1,640], index: 2, kind: input, shape index: {}]   ;;  %s1228_s3 = inlined_call_operand.hbm [shape: f32[16,640], index: 3, kind: output, shape index: {}]  }
   0x1   :  { %10 = vsyncpa [#allocation3 + $0x1], 0 }
   0x2   :  { %11 = vsyncpa [#allocation6], 0 }
   0x3   :  { %12 = vsyncpa [#allocation4], 0 }
   0x4   :  { %14 = vsyncpa [#allocation4 + $0x1], 0  ;;  %s998_s12 = smov 0   ;;  %s1000_s13 = smov 0  }
   0x5   :  { %s1002_s14 = smov 0   ;;  %s1004_s15 = smov 0  }
   0x6   :  { %s1006_s16 = smov 0   ;;  %s1008_s17 = smov 0  }
   0x7 LB: > { %s655_s18 = sadd.s32 4294967295, %s968_s17   ;;  %s656_s19 = sadd.s32 4294967294, %s968_s17   ;;  %s968_s17 = sphi %s1008_s17, %s20_s17   ;;  %s964_s16 = sphi %s1006_s16, %s1252_s16   ;;  %s960_s15 = sphi %s1004_s15, %s1251_s15   ;;  %s956_s14 = sphi %s1002_s14, %s1250_s14   ;;  %s952_s13 = sphi %s1000_s13, %s1249_s13   ;;  %s948_s12 = sphi %s998_s12, %s1248_s12  }
   0x8   : > { %p52_p0 = scmp.ne.s32.totalorder %s952_s13, %s948_s12  ;;  %p1032_p1 = scmp.eq.s32.totalorder %s655_s18, 0 }
   0x9   : > { %p1036_p2 = scmp.eq.s32.totalorder %s655_s18, 1  ;;  %p136_p3 = scmp.eq.s32.totalorder %s656_s19, 1 }
   0xa   : > { %s1233_s20 = scalar_select %p1032_p1, 1, 0 }
   0xb   : > { %s1234_s21 = scalar_select %p1036_p2, 1, 0 }
   0xc   : > { %p1042_p4 = por %p1032_p1, %p52_p0  ;;  %p657_p5 = scmp.ge.s32.totalorder %s968_s17, 1 }
   0xd   : > { %p1047_p6 = por %p136_p3, %p52_p0  ;;  %p143_p7 = scmp.lt.s32.totalorder %s968_s17, 3 }
   0xe   : > { %s1235_s22 = scalar_select %p1042_p4, 1, 0 }
   0xf   : > { %s1236_s23 = scalar_select %p1047_p6, 1, 0 }
  0x10   : > { %p1052_p8 = pnand %p657_p5, %p143_p7  ;;  %s970_s25 = smov [#allocation5]  }
  0x11   : > { %s158_s26 = sshll.u32 %s970_s25, 4  ;;  %s32_s28 = sadd.s32 1, %s964_s16  ;;  %s159_s26 = int_to_ptr.vmem [resolvable:$true] %s158_s26 }
  0x12   : > { %s1237_s24 = scalar_select %p1052_p8, 1, 0 }
  0x13   : > { %p754_p9 = pneg %p1052_p8  ;;  %s824_s4 = scalar_lea.hbm %s1226_s1, 5120 }
  0x14   : > { %p825_p12 = scmp.ne.s32.totalorder %s1226_s1, %s824_s4  ;;  %p831_p5 = scmp.lt.u32.totalorder %s824_s4, %s1226_s1 }
  0x15   : > { %p1061_p11 = pnand %p754_p9, %p1032_p1 }
  0x17   : > { %p826_p13 = pneg %p1061_p11 }
  0x19   : > { %p827_p0 = pnand %p826_p13, %p825_p12 }
  0x1b   : > { %p828_p3 = pneg %p827_p0 }
  0x1d   : > { %p833_p7 = pnand %p831_p5, %p828_p3 }
  0x1f   : > { %836 = shalt.err (!%p833_p7)
}
  0x20   : > { %s837_s9 = scalar_lea.vmem %s159_s26, 5120  ;;  %p845_p1 = scmp.lt.s32.totalorder %s159_s26, %s159_s26 }
  0x21   : > { %p838_p9 = scmp.ne.s32.totalorder %s159_s26, %s837_s9  ;;  %p846_p4 = scmp.lt.s32.totalorder %s837_s9, %s837_s9 }
  0x23   : > { %p840_p10 = pnand %p838_p9, %p826_p13  ;;  %p847_p8 = por %p846_p4, %p845_p1 }
  0x25   : > { %p841_p6 = pneg %p840_p10 }
  0x27   : > { %p848_p2 = pnand %p847_p8, %p841_p6 }
  0x29   : > { %851 = shalt.err (!%p848_p2)
}
  0x2a   : > { %s971_s10 = smov 640   ;;  %s972_s11 = smov 40  }
  0x2b   : > { %757 = dma.hbm_to_vmem [thread:$0]  (!%p1061_p11), %s1226_s1, 5120, %s159_s26, [#allocation6], %s971_s10, %s971_s10, %s972_s11  }
  0x2c   : > { %p34_p1 = scmp.ge.s32.totalorder %s32_s28, 2  ;;  %s39_s25 = sadd.s32 1, %s956_s14 }
  0x2d   : > { %p46_p2 = scmp.ne.s32.totalorder %s956_s14, %s952_s13  ;;  %p47_p4 = scmp.eq.s32.totalorder %s968_s17, 0 }
  0x2e   : > { %s1254_s28 = smov (%p34_p1, %s32_s28), 0  ;;  %p1240_p8 = scmp.ne.s32.totalorder %s1234_s21, 0 }
  0x2f   : > { %p1088_p6 = por %p47_p4, %p46_p2  ;;  %s36_s27 = ssub.s32 %s964_s16, %s1254_s28 }
  0x30   : > { %p1094_p10 = por %p1240_p8, %p46_p2  ;;  %p767_p12 = scmp.lt.s32.totalorder %s968_s17, 2 }
  0x31   : > { %p37_p11 = scmp.eq.s32.totalorder %s36_s27, 0  ;;  %s180_s26 = sand.u32 1, %s956_s14  }
  0x32   : > { %s661_s4 = sshll.u32 %s180_s26, 3  ;;  %s662_s6 = sshll.u32 %s964_s16, 7 }
  0x33   : > { %s1103_s5 = scalar_select %p37_p11, %s956_s14, %s39_s25  }
  0x34   : > { %s1109_s9 = scalar_lea.hbm %s1225_s0, %s662_s6  ;;  %s184_s21 = scalar_lea.vmem [#allocation2], %s661_s4 }
  0x35   : > { %s191_s10 = sshll.u32 %s184_s21, 4  ;;  %p1115_p13 = pnand %p767_p12, %p1088_p6  ;;  %s1111_s10 = int_to_ptr.vmem [resolvable:$true] %s191_s10 }
  0x36   : > { %s181_s18 = scalar_lea.sflag [#allocation3], %s180_s26  ;;  %s852_s19 = scalar_lea.hbm %s1109_s9, 128 }
  0x37   : > { %p853_p0 = scmp.ne.s32.totalorder %s1109_s9, %s852_s19  ;;  %p854_p3 = pneg %p1115_p13 }
  0x38   : > { %s857_s4 = scalar_lea.hbm %s1225_s0, 256  ;;  %p858_p9 = scmp.lt.u32.totalorder %s1109_s9, %s1225_s0 }
  0x39   : > { %p855_p5 = pnand %p854_p3, %p853_p0  ;;  %p859_p1 = scmp.lt.u32.totalorder %s857_s4, %s852_s19 }
  0x3a   : > { %p861_p4 = scmp.lt.u32.totalorder %s852_s19, %s1109_s9 }
  0x3b   : > { %p856_p7 = pneg %p855_p5  ;;  %p860_p2 = por %p859_p1, %p858_p9 }
  0x3d   : > { %p862_p6 = por %p861_p4, %p860_p2 }
  0x3f   : > { %p863_p8 = pnand %p862_p6, %p856_p7 }
  0x41   : > { %866 = shalt.err (!%p863_p8)
}
  0x42   : > { %s867_s26 = scalar_lea.vmem %s1111_s10, 128  ;;  %s973_s7 = smov [#allocation2]  }
  0x43   : > { %p868_p12 = scmp.ne.s32.totalorder %s1111_s10, %s867_s26  ;;  %s872_s8 = sshll.u32 %s973_s7, 4  ;;  %s873_s8 = int_to_ptr.vmem [resolvable:$false] %s872_s8 }
  0x44   : > { %s874_s21 = scalar_lea.vmem %s873_s8, 256  ;;  %p875_p5 = scmp.lt.s32.totalorder %s1111_s10, %s873_s8 }
  0x45   : > { %p870_p11 = pnand %p868_p12, %p854_p3  ;;  %p876_p9 = scmp.lt.s32.totalorder %s874_s21, %s867_s26 }
  0x47   : > { %p871_p0 = pneg %p870_p11  ;;  %p877_p1 = por %p876_p9, %p875_p5 }
  0x49   : > { %p878_p2 = pnand %p877_p1, %p871_p0 }
  0x4b   : > { %881 = shalt.err (!%p878_p2)
}
  0x4c   : > { %761 = dma.hbm_to_vmem [thread:$0]  (!%p1115_p13), %s1109_s9, 128, %s1111_s10, %s181_s18  }
  0x4d   : > { %p1243_p7 = scmp.ne.s32.totalorder %s1237_s24, 0 }
  0x4e   : > { %s1147_s19 = sand.u32 (!%p1243_p7), 1, %s952_s13   ;;  %p1244_p3 = scmp.ne.s32.totalorder (!%p1243_p7), %s1235_s22, 0 }
  0x4f   : > { %200 = sbr.rel (%p1243_p7) target bundleno = 353 (0x161), region = 32  ;;  %s664_s25 = sshll.u32 (!%p1243_p7), %s1147_s19, 3 }
  0x50   : > { %s203_s27 = scalar_lea.sflag (!%p1243_p7), [#allocation3], %s1147_s19  ;;  %s1151_s4 = scalar_lea.vmem (!%p1243_p7), [#allocation2], %s664_s25 }
  0x56   : > { %935 = dma.done.wait (%p1244_p3), %s203_s27, 128  }
  0x57   : > { %937 = vsyncadd (%p1244_p3), %s203_s27, 4294967168  ;;  %p1245_p13 = scmp.ne.s32.totalorder %s1233_s20, 0 }
  0x59   : > { %939 = dma.done.wait (%p1245_p13), [#allocation6], 5120  }
  0x5a   : > { %941 = vsyncadd (%p1245_p13), [#allocation6], 4294962176  ;;  %v974_v0 = vmov 0.0   ;;  %v246_v1 = vld [vmem:[#allocation5 + $0x8] sm:$0xff]  ;;  %v251_v2 = vld [vmem:[#allocation5 + $0x30] sm:$0xff]  ;;  %vm312_vm0 = vcmask 523264   ;;  %v287_v63 = vlaneseq }
  0x5b   : > { %380 = vmatprep.mubr.f32.mxu0 %v974_v0  ;;  %451 = vmatprep.mubr.f32.mxu1 %v974_v0  ;;  %v245_v3 = vld [vmem:[#allocation5] sm:$0xff]  ;;  %v700_v4 = vpack.c.bf16 %v251_v2, %v246_v1  ;;  %v250_v5 = vld [vmem:[#allocation5 + $0x28] sm:$0xff]  ;;  %v256_v6 = vld [vmem:[#allocation5 + $0x58] sm:$0xff]  ;;  %v975_v52 = vmov 0.0|0.0   ;;  %vm976_vm1 = vmmov 0   ;;  %s744_s24 = smul.u32 40, %s1147_s19 }
  0x5c   : > { %v261_v7 = vld [vmem:[#allocation5 + $0x80] sm:$0xff]  ;;  %v702_v8 = vpack.c.bf16 %v250_v5, %v245_v3  ;;  %v255_v10 = vld [vmem:[#allocation5 + $0x50] sm:$0xff]  ;;  %v260_v11 = vld [vmem:[#allocation5 + $0x78] sm:$0xff]  ;;  %s745_s10 = smul.u32 640, %s960_s15  ;;  %s534_s26 = scalar_lea.sflag [#allocation4], %s1147_s19 }
  0x5d   : > { %v704_v9 = vpack.c.bf16 %v261_v7, %v256_v6  ;;  %v266_v12 = vld [vmem:[#allocation5 + $0xa8] sm:$0xff]  ;;  %701 = vmatprep.subr.bf16.mxu0 %v700_v4  ;;  %v271_v13 = vld [vmem:[#allocation5 + $0xd0] sm:$0xff]  ;;  %v706_v14 = vpack.c.bf16 %v260_v11, %v255_v10  ;;  %v265_v15 = vld [vmem:[#allocation5 + $0xa0] sm:$0xff]  ;;  %s236_s9 = scalar_lea.vmem [#allocation7], %s744_s24  ;;  %s977_s15 = smov [#allocation7]  }
  0x5e   : > { %703 = vmatpush1.bf16.msra.mxu0 %v702_v8  ;;  %v270_v16 = vld [vmem:[#allocation5 + $0xc8] sm:$0xff]  ;;  %v708_v17 = vpack.c.bf16 %v271_v13, %v266_v12  ;;  %v276_v18 = vld [vmem:[#allocation5 + $0xf8] sm:$0xff]  ;;  %v253_v20 = vld [vmem:[#allocation5 + $0x40] sm:$0xff]  ;;  %s550_s11 = sshll.u32 %s236_s9, 4  ;;  %s1176_s6 = scalar_lea.hbm %s1228_s3, %s745_s10  ;;  %s1178_s11 = int_to_ptr.vmem [resolvable:$true] %s550_s11 }
  0x5f   : > { %705 = vmatprep.subr.bf16.mxu0 %v704_v9  ;;  %v248_v19 = vld [vmem:[#allocation5 + $0x18] sm:$0xff]  ;;  %v281_v21 = vld [vmem:[#allocation5 + $0x120] sm:$0xff]  ;;  %v247_v23 = vld [vmem:[#allocation5 + $0x10] sm:$0xff]  ;;  %v710_v27 = vpack.c.bf16 %v270_v16, %v265_v15  ;;  %s882_s7 = scalar_lea.vmem %s1178_s11, 640  ;;  %s886_s8 = sshll.u32 %s977_s15, 4  ;;  %s887_s8 = int_to_ptr.vmem [resolvable:$false] %s886_s8 }
  0x60   : > { %v716_v22 = vpack.c.bf16 %v253_v20, %v248_v19  ;;  %v252_v24 = vld [vmem:[#allocation5 + $0x38] sm:$0xff]  ;;  %v258_v26 = vld [vmem:[#allocation5 + $0x68] sm:$0xff]  ;;  %v263_v28 = vld [vmem:[#allocation5 + $0x90] sm:$0xff]  ;;  %v712_v31 = vpack.c.bf16 %v281_v21, %v276_v18  ;;  %p883_p4 = scmp.ne.s32.totalorder %s1178_s11, %s882_s7  ;;  %s888_s21 = scalar_lea.vmem %s887_s8, 1280 }
  0x61   : > { %v718_v25 = vpack.c.bf16 %v252_v24, %v247_v23  ;;  %v257_v29 = vld [vmem:[#allocation5 + $0x60] sm:$0xff]  ;;  %v262_v30 = vld [vmem:[#allocation5 + $0x88] sm:$0xff]  ;;  %v275_v32 = vld [vmem:[#allocation5 + $0xf0] sm:$0xff]  ;;  %v720_v34 = vpack.c.bf16 %v263_v28, %v258_v26  ;;  %p889_p12 = scmp.lt.s32.totalorder %s1178_s11, %s887_s8  ;;  %p890_p11 = scmp.lt.s32.totalorder %s888_s21, %s882_s7 }
  0x62   : > { %707 = vmatpush1.bf16.msra.mxu0 %v706_v14  ;;  %717 = vmatprep.subr.bf16.mxu1 %v716_v22  ;;  %v280_v33 = vld [vmem:[#allocation5 + $0x118] sm:$0xff]  ;;  %v722_v35 = vpack.c.bf16 %v262_v30, %v257_v29  ;;  %v273_v37 = vld [vmem:[#allocation5 + $0xe0] sm:$0xff]  ;;  %v267_v38 = vld [vmem:[#allocation5 + $0xb0] sm:$0xff]  ;;  %p884_p6 = pnand %p883_p4, %p1094_p10 }
  0x63   : > { %709 = vmatprep.subr.bf16.mxu0 %v708_v17  ;;  %719 = vmatpush1.bf16.msra.mxu1 %v718_v25  ;;  %v268_v36 = vld [vmem:[#allocation5 + $0xb8] sm:$0xff]  ;;  %v278_v41 = vld [vmem:[#allocation5 + $0x108] sm:$0xff]  ;;  %v714_v42 = vpack.c.bf16 %v280_v33, %v275_v32  ;;  %v283_v43 = vld [vmem:[#allocation5 + $0x130] sm:$0xff]  ;;  %p891_p0 = por %p890_p11, %p889_p12 }
  0x64   : > { %v272_v39 = vld [vmem:[#allocation5 + $0xd8] sm:$0xff]  ;;  %721 = vmatprep.subr.bf16.mxu1 %v720_v34  ;;  %v724_v40 = vpack.c.bf16 %v273_v37, %v268_v36  ;;  %v249_v44 = vld [vmem:[#allocation5 + $0x20] sm:$0xff]  ;;  %v254_v45 = vld [vmem:[#allocation5 + $0x48] sm:$0xff]  ;;  %v728_v47 = vpack.c.bf16 %v283_v43, %v278_v41  ;;  %p885_p8 = pneg %p884_p6 }
  0x65   : > { %v726_v46 = vpack.c.bf16 %v272_v39, %v267_v38  ;;  %v277_v48 = vld [vmem:[#allocation5 + $0x100] sm:$0xff]  ;;  %v282_v49 = vld [vmem:[#allocation5 + $0x128] sm:$0xff]  ;;  %v244_v50 = vld [vmem:[%s1151_s4] sm:$0xff]  ;;  %v733_v51 = vpack.c.bf16 %v254_v45, %v249_v44 }
  0x66   : > { %711 = vmatpush1.bf16.msra.mxu0 %v710_v27  ;;  %v259_v53 = vld [vmem:[#allocation5 + $0x70] sm:$0xff]  ;;  %v264_v54 = vld [vmem:[#allocation5 + $0x98] sm:$0xff]  ;;  %v730_v55 = vpack.c.bf16 %v282_v49, %v277_v48  ;;  %v269_v57 = vld [vmem:[#allocation5 + $0xc0] sm:$0xff]  ;;  %p892_p5 = pnand %p891_p0, %p885_p8 }
  0x67   : > { %713 = vmatprep.subr.bf16.mxu0 %v712_v31  ;;  %723 = vmatpush1.bf16.msra.mxu1 %v722_v35  ;;  %v736_v56 = vpack.c.bf16 %v264_v54, %v259_v53  ;;  %v274_v58 = vld [vmem:[#allocation5 + $0xe8] sm:$0xff]  ;;  %v279_v60 = vld [vmem:[#allocation5 + $0x110] sm:$0xff]  ;;  %v284_v61 = vld [vmem:[#allocation5 + $0x138] sm:$0xff] }
  0x68   : > { %725 = vmatprep.subr.bf16.mxu1 %v724_v40  ;;  %v739_v59 = vpack.c.bf16 %v274_v58, %v269_v57  ;;  %v742_v62 = vpack.c.bf16 %v284_v61, %v279_v60  ;;  %v285_v2 = vld [vmem:[%s1227_s2] sm:$0x1f] }
  0x6a   : > { %715 = vmatpush1.bf16.msra.mxu0 %v714_v42 }
  0x6b   : > { %732 = vmatprep.subr.bf16.mxu0 %v975_v52  ;;  %727 = vmatpush1.bf16.msra.mxu1 %v726_v46 }
  0x6c   : > { %729 = vmatprep.subr.bf16.mxu1 %v728_v47 }
  0x6d   : > { %666 = vmatmul.mubr.msk.f32.vlgmr.msra.gmra.mrb[0].mxu0 %vm312_vm0, %v244_v50 }
  0x6e   : > { %734 = vmatpush3.bf16.msra.mxu0 %v733_v51  ;;  %697 = vmatprep.mubr.msk.f32.mxu0 %vm976_vm1, %v974_v0  ;;  %v288_v0 = vshrl.u32 %v287_v63, 7 }
  0x6f   : > { %735 = vmatprep.subr.bf16.mxu0 %v975_v52  ;;  %731 = vmatpush1.bf16.msra.mxu1 %v730_v55 }
  0x70   : > { %v289_v1 = vsub.s32 0, %v288_v0  ;;  %v293_v3 = vsub.s32 1, %v288_v0  ;;  %v297_v6 = vsub.s32 2, %v288_v0  ;;  %v301_v7 = vsub.s32 3, %v288_v0 }
  0x71   : > { %v305_v18 = vsub.s32 4, %v288_v0 }
  0x72   : > { %737 = vmatpush3.bf16.msra.mxu0 %v736_v56  ;;  %667 = vmatmul.mubr.msk.f32.vlgmr.msra.gmra.mrb[0].mxu1 %vm312_vm0, %v244_v50  ;;  %v290_v4 = vrot.slane %v285_v2, %v289_v1  ;;  %v294_v5 = vrot.slane %v285_v2, %v293_v3  ;;  %v298_v12 = vrot.slane %v285_v2, %v297_v6 }
  0x73   : > { %738 = vmatprep.subr.bf16.mxu0 %v975_v52  ;;  %v302_v13 = vrot.slane %v285_v2, %v301_v7  ;;  %v306_v19 = vrot.slane %v285_v2, %v305_v18 }
  0x76   : > { %740 = vmatpush3.bf16.msra.mxu0 %v739_v59 }
  0x77   : > { %741 = vmatprep.subr.bf16.mxu0 %v975_v52 }
  0x7a   : > { %743 = vmatpush3.bf16.msra.mxu0 %v742_v62 }
  0x7d   : > { %698 = vmatmul.mubr.msk.f32.vlgmr.msra.gmra.mrb[2].mxu0 %vm312_vm0, %v244_v50 }
 0x140   : > { %v382_v8 = vpop.f32.mrb[0].mxu0 }
 0x141   : > { %v383_v9 = vadd.f32 %v382_v8, %v290_v4  ;;  %v384_v10 = vpop.f32.mrb[1].mxu0 }
 0x142   : > { %v385_v11 = vadd.f32 %v384_v10, %v294_v5 }
 0x143   : > { %528 = vst [vmem:[%s236_s9] sm:$0xff] %v383_v9 }
 0x144   : > { %529 = vst [vmem:[%s236_s9 + $0x8] sm:$0xff] %v385_v11 }
 0x145   : > { %v453_v14 = vpop.f32.mrb[0].mxu1 }
 0x146   : > { %v454_v15 = vadd.f32 %v453_v14, %v298_v12  ;;  %v455_v16 = vpop.f32.mrb[1].mxu1 }
 0x147   : > { %v456_v17 = vadd.f32 %v455_v16, %v302_v13 }
 0x148   : > { %530 = vst [vmem:[%s236_s9 + $0x10] sm:$0xff] %v454_v15 }
 0x149   : > { %531 = vst [vmem:[%s236_s9 + $0x18] sm:$0xff] %v456_v17 }
 0x150   : > { %v524_v20 = vpop.f32.mrb[2].mxu0 }
 0x151   : > { %v525_v21 = vadd.f32 %v524_v20, %v306_v19  ;;  %v699_v22 = vpop.f32.mrb[3].mxu0 }
 0x153   : > { %532 = vst [vmem:[%s236_s9 + $0x20] sm:$0xff] %v525_v21 }
 0x154   : > { %895 = shalt.err (!%p892_p5)
}
 0x155   : > { %s896_s19 = scalar_lea.hbm %s1176_s6, 640  ;;  %s900_s4 = scalar_lea.hbm %s1228_s3, 1280 }
 0x156   : > { %p897_p9 = scmp.ne.s32.totalorder %s1176_s6, %s896_s19  ;;  %p901_p7 = scmp.lt.u32.totalorder %s1176_s6, %s1228_s3 }
 0x157   : > { %p902_p3 = scmp.lt.u32.totalorder %s900_s4, %s896_s19  ;;  %p904_p4 = scmp.lt.u32.totalorder %s896_s19, %s1176_s6 }
 0x158   : > { %p898_p1 = pnand %p897_p9, %p1094_p10 }
 0x159   : > { %p903_p13 = por %p902_p3, %p901_p7 }
 0x15a   : > { %p899_p2 = pneg %p898_p1 }
 0x15b   : > { %p905_p6 = por %p904_p4, %p903_p13 }
 0x15d   : > { %p906_p8 = pnand %p905_p6, %p899_p2 }
 0x15f   : > { %909 = shalt.err (!%p906_p8)
}
 0x160   : > { %752 = dma.vmem_to_hbm [thread:$0]  (%p1094_p10), %s1178_s11, 640, %s1176_s6, %s534_s26  }
 0x161 PF: > { %s562_s24 = sand.u32 1, %s948_s12   ;;  %p1246_p12 = scmp.ne.s32.totalorder %s1236_s23, 0 }
 0x162   : > { %p1247_p11 = scmp.ge.s32.totalorder %s968_s17, 2  ;;  %s563_s9 = scalar_lea.sflag [#allocation4], %s562_s24 }
 0x164   : > { %p763_p0 = pnand %p1247_p11, %p1246_p12 }
 0x166   : > { %943 = dma.done.wait (!%p763_p0), %s563_s9, 640  }
 0x167   : > { %945 = vsyncadd (!%p763_p0), %s563_s9, 4294966656  ;;  %s20_s17 = sadd.s32 1, %s968_s17   ;;  %s1248_s12 = smov %s952_s13 }
 0x168   : > { %p17_p5 = scmp.ge.s32.totalorder %s20_s17, 4   ;;  %s1249_s13 = smov %s956_s14 }
 0x169   : > { %s1250_s14 = smov %s1103_s5  ;;  %s1251_s15 = smov %s964_s16 }
 0x16a   : > { %s1252_s16 = smov %s1254_s28  ;;  %19 = sbr.rel (!%p17_p5) target bundleno = 7 (0x7), region = 85 }
 0x171   :  { %568 = vsyncpa [#allocation3], 1 }
 0x172   :  { %570 = vsyncpa [#allocation3 + $0x1], 1 }
 0x173   :  { %571 = vsyncpa [#allocation6], 1 }
 0x174   :  { %572 = vsyncpa [#allocation4], 1 }
 0x175   :  { %574 = vsyncpa [#allocation4 + $0x1], 1 }

</bundles_post_ra>
